<compile_context>
chip_gen: v5e
topology: v5e:2x2
jax: 0.10.0
libtpu: 0.0.40
codegen_flags: <defaults>
</compile_context>

<pallas_src>
import functools

import jax
import jax.numpy as jnp
from jax.experimental import pallas as pl
from jax.experimental.pallas import tpu as pltpu


def _round_up(a: int, b: int) -> int:
    return ((a + b - 1) // b) * b


def _sublane(dtype) -> int:
    # Native second-to-last tile per element width: f32->8, bf16->16, i8->32.
    return {4: 8, 2: 16, 1: 32}.get(jnp.dtype(dtype).itemsize, 8)


def _mm_bias_kernel(x_ref, w_ref, b_ref, o_ref):
    # Whole reduction in one block: no scratch accumulator needed.
    acc = jnp.dot(x_ref[...], w_ref[...], preferred_element_type=jnp.float32)
    o_ref[...] = (acc + b_ref[...].astype(jnp.float32)).astype(o_ref.dtype)


def _mm_bias_acc_kernel(x_ref, w_ref, b_ref, o_ref, acc_ref):
    # K-tiled: f32 VMEM accumulator resident across the (last, "arbitrary")
    # K grid axis.  All blocks are full (zero-padded in HBM), so no masking.
    k = pl.program_id(2)
    part = jnp.dot(x_ref[...], w_ref[...], preferred_element_type=jnp.float32)

    @pl.when(k == 0)
    def _():
        acc_ref[...] = part          # write, not zero-fill + read-modify-write

    @pl.when(k > 0)
    def _():
        acc_ref[...] += part

    @pl.when(k == pl.num_programs(2) - 1)
    def _():
        o_ref[...] = (acc_ref[...]
                      + b_ref[...].astype(jnp.float32)).astype(o_ref.dtype)


@functools.partial(jax.jit, static_argnames=("tm", "tn", "tk"))
def conv1d(x, weight, bias, *, tm=512, tn=1024, tk=2048):
    """y[..., :] = x[..., :] @ weight + bias  (weight: (nx, nf), bias: (nf,))."""
    nx, nf = weight.shape
    orig_shape = x.shape
    assert orig_shape[-1] == nx
    x2d = x.reshape(-1, nx)
    m = x2d.shape[0]
    out_dtype = x.dtype

    # ---------------- tile selection ----------------
    sub = _sublane(x2d.dtype)
    tm = max(sub, (tm // sub) * sub)
    tn = max(128, tn)
    tm_eff = min(tm, _round_up(m, sub))

    # K: prefer the whole reduction in one block (no scratch, no K grid axis);
    # otherwise a 128-aligned tile with nx zero-padded up to a multiple.
    if nx <= tk:
        tk_eff, nx_p = nx, nx
    else:
        tk_eff = max(128, (min(tk, 1024) // 128) * 128)
        nx_p = _round_up(nx, tk_eff)

    # N: lane-dense output.  Either one block covering all of (128-padded) nf,
    # or the largest 128-multiple tile that divides it evenly.
    nf_p = _round_up(nf, 128)
    if nf_p <= tn:
        tn_eff = nf_p
    else:
        tn_eff = 128
        for d in (2048, 1024, 512, 256):
            if d <= tn and nf_p % d == 0:
                tn_eff = d
                break

    m_p = _round_up(m, tm_eff)
    grid_m = m_p // tm_eff
    # v7x shards the "parallel" axes over 2 TensorCores: if M collapses to one
    # block, keep >= 2 N blocks so both cores get work.
    if grid_m == 1 and tn_eff == nf_p and nf_p >= 256 and (nf_p // 2) % 128 == 0:
        tn_eff = nf_p // 2
    grid_n = nf_p // tn_eff
    grid_k = nx_p // tk_eff

    # ---------------- zero-padding (never read garbage) ----------------
    if m_p != m or nx_p != nx:
        x2d = jnp.pad(x2d, ((0, m_p - m), (0, nx_p - nx)))
    if nx_p != nx or nf_p != nf:
        # NOTE: for repeated inference calls, pre-pad weight/bias once at
        # parameter setup time to avoid this per-call HBM copy.
        weight = jnp.pad(weight, ((0, nx_p - nx), (0, nf_p - nf)))
    if nf_p != nf:
        bias = jnp.pad(bias, (0, nf_p - nf))
    bias2d = bias.reshape(1, nf_p)

    # ---------------- VMEM budget (double-buffered tiles + acc) ----------------
    x_it = x2d.dtype.itemsize
    w_it = weight.dtype.itemsize
    o_it = jnp.dtype(out_dtype).itemsize
    vmem_bytes = (
        2 * tm_eff * tk_eff * x_it
        + 2 * tk_eff * tn_eff * w_it
        + 2 * tm_eff * tn_eff * o_it
        + 2 * tn_eff * bias2d.dtype.itemsize
        + (tm_eff * tn_eff * 4 if grid_k > 1 else 0)
    )
    vmem_limit = max(16 << 20, min(int(vmem_bytes * 1.3) + (4 << 20), 48 << 20))

    # ---------------- pallas_call ----------------
    if grid_k == 1:
        out = pl.pallas_call(
            _mm_bias_kernel,
            out_shape=jax.ShapeDtypeStruct((m_p, nf_p), out_dtype),
            grid_spec=pltpu.PrefetchScalarGridSpec(
                num_scalar_prefetch=0,
                grid=(grid_m, grid_n),
                in_specs=[
                    pl.BlockSpec((tm_eff, tk_eff), lambda i, j: (i, 0)),   # x
                    pl.BlockSpec((tk_eff, tn_eff), lambda i, j: (0, j)),   # W
                    pl.BlockSpec((1, tn_eff), lambda i, j: (0, j)),        # b
                ],
                out_specs=pl.BlockSpec((tm_eff, tn_eff), lambda i, j: (i, j)),
            ),
            compiler_params=pltpu.CompilerParams(
                dimension_semantics=("parallel", "parallel"),
                vmem_limit_bytes=vmem_limit,
            ),
        )(x2d, weight, bias2d)
    else:
        out = pl.pallas_call(
            _mm_bias_acc_kernel,
            out_shape=jax.ShapeDtypeStruct((m_p, nf_p), out_dtype),
            grid_spec=pltpu.PrefetchScalarGridSpec(
                num_scalar_prefetch=0,
                grid=(grid_m, grid_n, grid_k),
                in_specs=[
                    pl.BlockSpec((tm_eff, tk_eff), lambda i, j, k: (i, k)),   # x
                    pl.BlockSpec((tk_eff, tn_eff), lambda i, j, k: (k, j)),   # W
                    pl.BlockSpec((1, tn_eff), lambda i, j, k: (0, j)),        # b
                ],
                out_specs=pl.BlockSpec((tm_eff, tn_eff), lambda i, j, k: (i, j)),
                scratch_shapes=[pltpu.VMEM((tm_eff, tn_eff), jnp.float32)],
            ),
            compiler_params=pltpu.CompilerParams(
                dimension_semantics=("parallel", "parallel", "arbitrary"),
                vmem_limit_bytes=vmem_limit,
            ),
        )(x2d, weight, bias2d)

    if m_p != m or nf_p != nf:
        out = out[:m, :nf]
    return out.reshape(orig_shape[:-1] + (nf,))


if __name__ == "__main__":
    # Module config: nx input features, nf output features (GPT-2 style).
    nx, nf = 32, 64
    batch, seq = 2, 8

    key = jax.random.PRNGKey(0)
    kx, kw = jax.random.split(key)

    # Params mirroring nn.init.normal_(std=0.02) and zero bias.
    weight = 0.02 * jax.random.normal(kw, (nx, nf), dtype=jnp.float32)
    bias = jnp.zeros((nf,), dtype=jnp.float32)
    x = jax.random.normal(kx, (batch, seq, nx), dtype=jnp.float32)

    y = conv1d(x, weight, bias)
    jax.block_until_ready(y)
    y_ref = (x.reshape(-1, nx) @ weight + bias).reshape(batch, seq, nf)
    assert y.shape == (batch, seq, nf)
    assert jnp.allclose(y, y_ref, atol=2e-2, rtol=2e-2), float(
        jnp.max(jnp.abs(y - y_ref)))

    # Stress check: non-multiple-of-128 dims; exercises M/N/K zero-padding and
    # the multi-step K accumulator path that previously read garbage.
    nx2, nf2, m2 = 200, 320, 408
    k1, k2, k3 = jax.random.split(jax.random.PRNGKey(1), 3)
    w2 = 0.02 * jax.random.normal(k1, (nx2, nf2), dtype=jnp.float32)
    b2 = 0.1 * jax.random.normal(k2, (nf2,), dtype=jnp.float32)
    x2 = jax.random.normal(k3, (m2, nx2), dtype=jnp.float32)
    y2 = conv1d(x2, w2, b2, tm=128, tn=128, tk=128)
    jax.block_until_ready(y2)
    y2_ref = x2 @ w2 + b2
    assert y2.shape == (m2, nf2)
    assert jnp.allclose(y2, y2_ref, atol=2e-2, rtol=2e-2), float(
        jnp.max(jnp.abs(y2 - y2_ref)))

    print("KERNEL_OK")
</pallas_src>

<mosaic_0001>
module attributes {stable_mosaic.version = 11 : i64} {
  func.func @_mm_bias_kernel(%arg0: i32, %arg1: i32, %arg2: memref<16x32xf32, #tpu.memory_space<vmem>>, %arg3: memref<32x128xf32, #tpu.memory_space<vmem>>, %arg4: memref<1x128xf32, #tpu.memory_space<vmem>>, %arg5: memref<16x128xf32, #tpu.memory_space<vmem>>) attributes {dimension_semantics = [#tpu.dimension_semantics<parallel>, #tpu.dimension_semantics<parallel>], iteration_bounds = array<i64: 1, 1>, scalar_prefetch = 0 : i64, scratch_operands = 0 : i64, tpu.core_type = #tpu.core_type<tc>, window_params = [{transform_indices = @transform_0, window_bounds = array<i64: 16, 32>}, {transform_indices = @transform_1, window_bounds = array<i64: 32, 128>}, {transform_indices = @transform_2, window_bounds = array<i64: 1, 128>}, {transform_indices = @transform_3, window_bounds = array<i64: 16, 128>}]} {
    %c0 = arith.constant 0 : index
    %c0_0 = arith.constant 0 : index
    %0 = vector.load %arg2[%c0, %c0_0] : memref<16x32xf32, #tpu.memory_space<vmem>>, vector<16x32xf32>
    %c0_1 = arith.constant 0 : index
    %c0_2 = arith.constant 0 : index
    %1 = vector.load %arg3[%c0_1, %c0_2] : memref<32x128xf32, #tpu.memory_space<vmem>>, vector<32x128xf32>
    %cst = arith.constant dense<0.000000e+00> : vector<16x128xf32>
    %2 = tpu.matmul %0, %1, %cst {dimension_numbers = #tpu.dot_dimension_numbers<[1], [0], [0], [1], [0, 0, 1, 1], [], []>} : vector<16x32xf32>, vector<32x128xf32>, vector<16x128xf32> -> vector<16x128xf32>
    %c0_3 = arith.constant 0 : index
    %c0_4 = arith.constant 0 : index
    %3 = vector.load %arg4[%c0_3, %c0_4] : memref<1x128xf32, #tpu.memory_space<vmem>>, vector<1x128xf32>
    %4 = vector.broadcast %3 : vector<1x128xf32> to vector<16x128xf32>
    %5 = arith.addf %2, %4 : vector<16x128xf32>
    %c0_5 = arith.constant 0 : index
    %c0_6 = arith.constant 0 : index
    %6 = vector.load %arg5[%c0_5, %c0_6] : memref<16x128xf32, #tpu.memory_space<vmem>>, vector<16x128xf32>
    tpu.vector_store %arg5[%c0_5, %c0_6], %5 {strides = array<i32>} : memref<16x128xf32, #tpu.memory_space<vmem>>, vector<16x128xf32>,
    return
  }
  func.func @transform_0(%arg0: i32, %arg1: i32) -> (i32, i32) {
    %c0_i32 = arith.constant 0 : i32
    %c0_i32_0 = arith.constant 0 : i32
    return %arg0, %c0_i32 : i32, i32
  }
  func.func @transform_1(%arg0: i32, %arg1: i32) -> (i32, i32) {
    %c0_i32 = arith.constant 0 : i32
    %c0_i32_0 = arith.constant 0 : i32
    return %c0_i32, %arg1 : i32, i32
  }
  func.func @transform_2(%arg0: i32, %arg1: i32) -> (i32, i32) {
    %c0_i32 = arith.constant 0 : i32
    %c0_i32_0 = arith.constant 0 : i32
    return %c0_i32, %arg1 : i32, i32
  }
  func.func @transform_3(%arg0: i32, %arg1: i32) -> (i32, i32) {
    %c0_i32 = arith.constant 0 : i32
    return %arg0, %arg1 : i32, i32
  }
}

</mosaic_0001>

<bundles_post_ra>
// kernel: conv1d.1
= control target key start
LH: loop header
LB: loop body
LE: loop exit
PB: predicated region body
PF: predicated region fallthrough
CT: control target
= control target key end

     0   :  { %vm24_vm0 = vcmask 261120   ;;  %s114_s1 = inlined_call_operand.vmem [shape: f32[32,128], index: 1, kind: input, shape index: {}]   ;;  %s115_s2 = inlined_call_operand.vmem [shape: f32[1,128], index: 2, kind: input, shape index: {}]   ;;  %s116_s0 = inlined_call_operand.vmem [shape: f32[16,32], index: 0, kind: input, shape index: {}]   ;;  %s117_s3 = inlined_call_operand.vmem [shape: f32[16,128], index: 3, kind: output, shape index: {}]  }
   0x1   :  { %v19_v0 = vld [vmem:[%s114_s1 + $0x18] sm:$0xff]  ;;  %v18_v1 = vld [vmem:[%s114_s1 + $0x10] sm:$0xff]  ;;  %v17_v2 = vld [vmem:[%s114_s1 + $0x8] sm:$0xff] }
   0x2   :  { %43 = vmatpush.msra.mxu0 %v19_v0  ;;  %62 = vmatpush.msra.mxu1 %v19_v0  ;;  %v16_v3 = vld [vmem:[%s114_s1] sm:$0xff]  ;;  %v15_v5 = vld [vmem:[%s116_s0 + $0x8] sm:$0xff] }
   0x3   :  { %v14_v4 = vld [vmem:[%s116_s0] sm:$0xff] }
   0x4   :  { %44 = vmatpush.msra.mxu0 %v18_v1  ;;  %63 = vmatpush.msra.mxu1 %v18_v1  ;;  %v66_v6 = vld [vmem:[%s115_s2] ss:$0 sm:$0xff] }
   0x6   :  { %45 = vmatpush.msra.mxu0 %v17_v2  ;;  %64 = vmatpush.msra.mxu1 %v17_v2 }
   0x8   :  { %46 = vmatpush.msra.mxu0 %v16_v3  ;;  %65 = vmatpush.msra.mxu1 %v16_v3 }
   0x9   :  { %60 = vmatmul.msk.f32.vlgmr.msra.gmra.mxu0 %vm24_vm0, %v14_v4  ;;  %61 = vmatmul.msk.f32.vlgmr.msra.gmra.mxu1 %vm24_vm0, %v15_v5 }
  0x86   :  { %v48_v7 = vpop.f32.mrf.mxu0  ;;  %v51_v8 = vpop.f32.mrf.mxu1 }
  0x87   :  { %v49_v9 = vadd.f32 %v66_v6, %v48_v7  ;;  %v52_v10 = vadd.f32 %v66_v6, %v51_v8 }
  0x89   :  { %54 = vst [vmem:[%s117_s3] sm:$0xff] %v49_v9 }
  0x8a   :  { %55 = vst [vmem:[%s117_s3 + $0x8] sm:$0xff] %v52_v10 }

</bundles_post_ra>
